<compile_context>
chip_gen: v7x
topology: tpu7x:2x2x1
jax: 0.10.0
libtpu: 0.0.40
codegen_flags: <defaults>
</compile_context>

<pallas_src>
import functools
import math

import jax
import jax.numpy as jnp
from jax import lax
from jax.experimental import pallas as pl
from jax.experimental.pallas import tpu as pltpu


def _round_up(x, m):
    return ((x + m - 1) // m) * m


# ------------------------- q/k/v projection kernels --------------------------
# y = clamp(bf16(x) @ bf16(w) [+ b], -255, 255) [* scale] -> bf16, head-major.
def _qkv_proj_kernel(x_ref, w_ref, o_ref, *, scale, num_heads, head_dim):
    x = x_ref[...].astype(jnp.bfloat16)                       # native-MXU operand
    y = jnp.dot(x, w_ref[...], preferred_element_type=jnp.float32)
    y = jnp.clip(y, -255.0, 255.0)
    if scale is not None:
        y = y * scale
    y = y.astype(o_ref.dtype)                                  # (tm, C) bf16
    for h in range(num_heads):                                 # static unroll
        o_ref[h] = y[:, h * head_dim:(h + 1) * head_dim]


def _qkv_proj_bias_kernel(x_ref, w_ref, b_ref, o_ref, *, scale, num_heads,
                          head_dim):
    x = x_ref[...].astype(jnp.bfloat16)
    y = jnp.dot(x, w_ref[...], preferred_element_type=jnp.float32)
    y = y + b_ref[...]
    y = jnp.clip(y, -255.0, 255.0)
    if scale is not None:
        y = y * scale
    y = y.astype(o_ref.dtype)
    for h in range(num_heads):
        o_ref[h] = y[:, h * head_dim:(h + 1) * head_dim]


def pallas_qkv_projection(x, w_bf16, b, *, num_heads, scale=None,
                          block_rows=256):
    """x: (B, Tp, C) f32, w_bf16: (C, C) bf16, b: (C,) f32 or None.
    Returns (B, H, Tp, D) bf16, clamped (and scaled, if given)."""
    B, Tp, C = x.shape
    D = C // num_heads
    grid = (B, Tp // block_rows)

    if b is None:
        kern = functools.partial(_qkv_proj_kernel, scale=scale,
                                 num_heads=num_heads, head_dim=D)
        in_specs = [
            pl.BlockSpec((None, block_rows, C), lambda bb, i: (bb, i, 0)),
            pl.BlockSpec((C, C), lambda bb, i: (0, 0)),
        ]
        args = (x, w_bf16)
    else:
        kern = functools.partial(_qkv_proj_bias_kernel, scale=scale,
                                 num_heads=num_heads, head_dim=D)
        in_specs = [
            pl.BlockSpec((None, block_rows, C), lambda bb, i: (bb, i, 0)),
            pl.BlockSpec((C, C), lambda bb, i: (0, 0)),
            pl.BlockSpec((1, C), lambda bb, i: (0, 0)),
        ]
        args = (x, w_bf16, b.reshape(1, C))

    return pl.pallas_call(
        kern,
        out_shape=jax.ShapeDtypeStruct((B, num_heads, Tp, D), jnp.bfloat16),
        grid=grid,
        in_specs=in_specs,
        out_specs=pl.BlockSpec((None, num_heads, block_rows, D),
                               lambda bb, i: (bb, 0, i, 0)),
        compiler_params=pltpu.CompilerParams(
            dimension_semantics=("parallel", "parallel")),
    )(*args)


# --------------------------- flash attention kernel ---------------------------
def _flash_kernel(q_ref, k_ref, v_ref, o_ref, m_sc, l_sc, acc_sc, *,
                  kv_len, block_kv):
    j = pl.program_id(2)
    num_heads = acc_sc.shape[0]

    @pl.when(j == 0)
    def _():
        m_sc[...] = jnp.full(m_sc.shape, -jnp.inf, m_sc.dtype)
        l_sc[...] = jnp.zeros(l_sc.shape, l_sc.dtype)
        acc_sc[...] = jnp.zeros(acc_sc.shape, acc_sc.dtype)

    q = q_ref[...]                                   # (H, tq, D) bf16 (scaled)
    k = k_ref[...]                                   # (H, tk, D) bf16
    v = v_ref[...]                                   # (H, tk, D) bf16

    # Scores: batched over heads, f32 MXU accumulation, no explicit K transpose.
    s = jnp.einsum("hqd,hkd->hqk", q, k,
                   preferred_element_type=jnp.float32)          # (H, tq, tk)

    if kv_len % block_kv != 0:
        # Mask the zero-padded tail: only executed on the last KV tile, and the
        # mask predicate is built from a (1, 1, block_kv) iota (not full-size).
        last_j = pl.num_programs(2) - 1

        def _mask_tail(sv):
            kv_ids = j * block_kv + lax.broadcasted_iota(
                jnp.int32, (1, 1, block_kv), 2)
            return jnp.where(kv_ids < kv_len, sv, -jnp.inf)

        s = lax.cond(j == last_j, _mask_tail, lambda sv: sv, s)

    m_prev = m_sc[...]                                           # (H, tq, 1)
    m_new = jnp.maximum(m_prev, jnp.max(s, axis=-1, keepdims=True))
    alpha = jnp.exp(m_prev - m_new)
    p = jnp.exp(s - m_new)                                       # f32 (EUP)
    l_sc[...] = alpha * l_sc[...] + jnp.sum(p, axis=-1, keepdims=True)
    acc_sc[...] = alpha * acc_sc[...] + jnp.einsum(
        "hqk,hkd->hqd", p.astype(v.dtype), v,
        preferred_element_type=jnp.float32)                      # (H, tq, D)
    m_sc[...] = m_new

    @pl.when(j == pl.num_programs(2) - 1)
    def _():
        inv_l = pl.reciprocal(l_sc[...], approx=True)
        o = (acc_sc[...] * inv_l).astype(o_ref.dtype)            # (H, tq, D)
        # Head merge done once per query tile: lane-dense (tq, C) bf16 output.
        o_ref[...] = jnp.concatenate([o[h] for h in range(num_heads)], axis=-1)


def pallas_flash_attention(qh, kh, vh, *, block_q, block_kv, kv_len):
    """qh: (B, H, Nq, D) bf16 (pre-scaled), kh/vh: (B, H, Mk, D) bf16.
    Returns (B, Nq, H*D) bf16, heads merged along the channel axis."""
    B, H, Nq, D = qh.shape
    Mk = kh.shape[2]
    C = H * D
    grid = (B, Nq // block_q, Mk // block_kv)
    kern = functools.partial(_flash_kernel, kv_len=kv_len, block_kv=block_kv)
    return pl.pallas_call(
        kern,
        out_shape=jax.ShapeDtypeStruct((B, Nq, C), jnp.bfloat16),
        grid=grid,
        in_specs=[
            pl.BlockSpec((None, H, block_q, D), lambda b, i, j: (b, 0, i, 0)),
            pl.BlockSpec((None, H, block_kv, D), lambda b, i, j: (b, 0, j, 0)),
            pl.BlockSpec((None, H, block_kv, D), lambda b, i, j: (b, 0, j, 0)),
        ],
        out_specs=pl.BlockSpec((None, block_q, C), lambda b, i, j: (b, i, 0)),
        scratch_shapes=[
            pltpu.VMEM((H, block_q, 1), jnp.float32),   # running max
            pltpu.VMEM((H, block_q, 1), jnp.float32),   # running denom
            pltpu.VMEM((H, block_q, D), jnp.float32),   # running output
        ],
        compiler_params=pltpu.CompilerParams(
            dimension_semantics=("parallel", "parallel", "arbitrary"),
            vmem_limit_bytes=48 * 1024 * 1024),
    )(qh, kh, vh)


# ------------------------ output projection (plain linear) --------------------
def _out_proj_kernel(x_ref, w_ref, b_ref, y_ref):
    # x is the lane-dense bf16 attention output; single full-depth K=C matmul.
    y = jnp.dot(x_ref[...], w_ref[...], preferred_element_type=jnp.float32)
    y_ref[...] = (y + b_ref[...]).astype(y_ref.dtype)


def pallas_out_projection(x, w_bf16, b, *, block_rows):
    """x: (B, Tp, C) bf16, w_bf16: (C, C) bf16, b: (C,) f32 -> (B, Tp, C) f32."""
    B, Tp, C = x.shape
    return pl.pallas_call(
        _out_proj_kernel,
        out_shape=jax.ShapeDtypeStruct((B, Tp, C), jnp.float32),
        grid=(B, Tp // block_rows),
        in_specs=[
            pl.BlockSpec((None, block_rows, C), lambda bb, i: (bb, i, 0)),
            pl.BlockSpec((C, C), lambda bb, i: (0, 0)),
            pl.BlockSpec((1, C), lambda bb, i: (0, 0)),
        ],
        out_specs=pl.BlockSpec((None, block_rows, C), lambda bb, i: (bb, i, 0)),
        compiler_params=pltpu.CompilerParams(
            dimension_semantics=("parallel", "parallel")),
    )(x, w_bf16, b.reshape(1, C))


# ------------------------------ module wrapper --------------------------------
def init_params(key, dim, qkv_bias=False):
    """Deterministic PyTorch-Linear-style init.  Weights stored as (in, out)."""
    ks = jax.random.split(key, 8)
    bound = 1.0 / math.sqrt(dim)

    def w(kk):
        return jax.random.uniform(kk, (dim, dim), jnp.float32, -bound, bound)

    def b(kk):
        return jax.random.uniform(kk, (dim,), jnp.float32, -bound, bound)

    return {
        "wq": w(ks[0]), "bq": b(ks[1]) if qkv_bias else None,
        "wk": w(ks[2]), "bk": b(ks[3]) if qkv_bias else None,
        "wv": w(ks[4]), "bv": b(ks[5]) if qkv_bias else None,
        "wp": w(ks[6]), "bp": b(ks[7]),   # proj always has bias
    }


def attention_flash(q, k, v, params, num_heads, qk_scale=None,
                    block_q=256, block_kv=256):
    B, N, C = q.shape
    _, M, _ = k.shape
    assert k.shape == v.shape
    D = C // num_heads
    scale = qk_scale if qk_scale is not None else D ** (-0.5)

    # Token tiles rounded to multiples of 16 (bf16 sublane packing), <=256.
    tq = min(block_q, _round_up(N, 16))
    tk = min(block_kv, _round_up(M, 16))
    Np = _round_up(N, tq)
    Mp = _round_up(M, tk)
    if Np != N:
        q = jnp.pad(q, ((0, 0), (0, Np - N), (0, 0)))
    if Mp != M:
        k = jnp.pad(k, ((0, 0), (0, Mp - M), (0, 0)))
        v = jnp.pad(v, ((0, 0), (0, Mp - M), (0, 0)))

    # bf16 weights -> native single-pass MXU matmuls (f32 accumulation).
    wq = params["wq"].astype(jnp.bfloat16)
    wk = params["wk"].astype(jnp.bfloat16)
    wv = params["wv"].astype(jnp.bfloat16)
    wp = params["wp"].astype(jnp.bfloat16)

    # Projections (clamp + bf16, softmax scale folded into q), head-major out.
    # NOTE: q/k/v are distinct inputs here (cross-attention-style signature), so
    # the three projections are not fused into a single pallas_call.
    qh = pallas_qkv_projection(q, wq, params["bq"], num_heads=num_heads,
                               scale=scale, block_rows=tq)
    kh = pallas_qkv_projection(k, wk, params["bk"], num_heads=num_heads,
                               block_rows=tk)
    vh = pallas_qkv_projection(v, wv, params["bv"], num_heads=num_heads,
                               block_rows=tk)

    # Online-softmax flash attention; output is lane-dense (B, Np, C) bf16.
    o = pallas_flash_attention(qh, kh, vh, block_q=tq, block_kv=tk, kv_len=M)

    # Output projection: plain full-depth linear on the merged-head output.
    x = pallas_out_projection(o, wp, params["bp"], block_rows=tq)
    if Np != N:
        x = x[:, :N, :]
    return x


# ------------------------------ pure-JAX reference ----------------------------
def reference_attention_flash(q, k, v, params, num_heads, qk_scale=None):
    B, N, C = q.shape
    M = k.shape[1]
    D = C // num_heads
    scale = qk_scale if qk_scale is not None else D ** (-0.5)

    def lin(x, w, b):
        y = x @ w
        return y if b is None else y + b

    qp = jnp.clip(lin(q, params["wq"], params["bq"]), -255.0, 255.0)
    kp = jnp.clip(lin(k, params["wk"], params["bk"]), -255.0, 255.0)
    vp = jnp.clip(lin(v, params["wv"], params["bv"]), -255.0, 255.0)
    qh = qp.reshape(B, N, num_heads, D).transpose(0, 2, 1, 3)
    kh = kp.reshape(B, M, num_heads, D).transpose(0, 2, 1, 3)
    vh = vp.reshape(B, M, num_heads, D).transpose(0, 2, 1, 3)
    s = jnp.einsum("bhqd,bhkd->bhqk", qh, kh) * scale
    p = jax.nn.softmax(s, axis=-1)
    o = jnp.einsum("bhqk,bhkd->bhqd", p, vh)
    o = o.transpose(0, 2, 1, 3).reshape(B, N, C)
    return o @ params["wp"] + params["bp"]


# ---------------------------------- main --------------------------------------
if __name__ == "__main__":
    B, N, M, C, H = 2, 8, 8, 32, 8   # head_dim = 4

    key = jax.random.PRNGKey(0)
    kq, kk, kv, kp = jax.random.split(key, 4)
    q = jax.random.normal(kq, (B, N, C), jnp.float32)
    k = jax.random.normal(kk, (B, M, C), jnp.float32)
    v = jax.random.normal(kv, (B, M, C), jnp.float32)

    params = init_params(kp, C, qkv_bias=False)

    out = attention_flash(q, k, v, params, num_heads=H)
    out = jax.block_until_ready(out)

    ref = reference_attention_flash(q, k, v, params, num_heads=H)
    ref = jax.block_until_ready(ref)

    assert out.shape == (B, N, C) and out.dtype == jnp.float32
    max_err = float(jnp.max(jnp.abs(out - ref)))
    assert max_err < 2e-2, f"max abs error vs reference: {max_err}"
    print("KERNEL_OK")
</pallas_src>

<mosaic_0001>
module attributes {stable_mosaic.version = 11 : i64} {
  func.func @_qkv_proj_kernel(%arg0: i32, %arg1: i32, %arg2: memref<1x16x32xf32, #tpu.memory_space<vmem>>, %arg3: memref<32x32xbf16, #tpu.memory_space<vmem>>, %arg4: memref<1x8x16x4xbf16, #tpu.memory_space<vmem>>) attributes {dimension_semantics = [#tpu.dimension_semantics<parallel>, #tpu.dimension_semantics<parallel>], iteration_bounds = array<i64: 2, 1>, scalar_prefetch = 0 : i64, scratch_operands = 0 : i64, tpu.core_type = #tpu.core_type<tc>, window_params = [{transform_indices = @transform_0, window_bounds = array<i64: 1, 16, 32>}, {pipeline_mode = #tpu.pipeline_mode<synchronous>, transform_indices = @transform_1, window_bounds = array<i64: 32, 32>}, {transform_indices = @transform_2, window_bounds = array<i64: 1, 8, 16, 4>}]} {
    %c0 = arith.constant 0 : index
    %c0_0 = arith.constant 0 : index
    %c0_1 = arith.constant 0 : index
    %0 = vector.load %arg2[%c0, %c0_0, %c0_1] : memref<1x16x32xf32, #tpu.memory_space<vmem>>, vector<1x16x32xf32>
    %1 = vector.shape_cast %0 : vector<1x16x32xf32> to vector<16x32xf32>
    %2 = arith.truncf %1 : vector<16x32xf32> to vector<16x32xbf16>
    %c0_2 = arith.constant 0 : index
    %c0_3 = arith.constant 0 : index
    %3 = vector.load %arg3[%c0_2, %c0_3] : memref<32x32xbf16, #tpu.memory_space<vmem>>, vector<32x32xbf16>
    %cst = arith.constant dense<0.000000e+00> : vector<16x32xf32>
    %4 = tpu.matmul %2, %3, %cst {dimension_numbers = #tpu.dot_dimension_numbers<[1], [0], [0], [1], [0, 0, 1, 1], [], []>} : vector<16x32xbf16>, vector<32x32xbf16>, vector<16x32xf32> -> vector<16x32xf32>
    %cst_4 = arith.constant -2.550000e+02 : f32
    %cst_5 = arith.constant 2.550000e+02 : f32
    %5 = vector.broadcast %cst_4 : f32 to vector<16x32xf32>
    %6 = arith.maximumf %5, %4 : vector<16x32xf32>
    %7 = vector.broadcast %cst_5 : f32 to vector<16x32xf32>
    %8 = arith.minimumf %7, %6 : vector<16x32xf32>
    %cst_6 = arith.constant 5.000000e-01 : f32
    %9 = vector.broadcast %cst_6 : f32 to vector<16x32xf32>
    %10 = arith.mulf %8, %9 : vector<16x32xf32>
    %11 = arith.truncf %10 : vector<16x32xf32> to vector<16x32xbf16>
    %12 = vector.extract_strided_slice %11 {offsets = [0, 0], sizes = [16, 4], strides = [1, 1]} : vector<16x32xbf16> to vector<16x4xbf16>
    %c0_7 = arith.constant 0 : index
    %c0_8 = arith.constant 0 : index
    %c0_9 = arith.constant 0 : index
    %c0_10 = arith.constant 0 : index
    %13 = vector.load %arg4[%c0_7, %c0_8, %c0_9, %c0_10] : memref<1x8x16x4xbf16, #tpu.memory_space<vmem>>, vector<1x1x16x4xbf16>
    %14 = vector.shape_cast %13 : vector<1x1x16x4xbf16> to vector<16x4xbf16>
    %15 = vector.shape_cast %12 : vector<16x4xbf16> to vector<1x1x16x4xbf16>
    tpu.vector_store %arg4[%c0_7, %c0_8, %c0_9, %c0_10], %15 {strides = array<i32>} : memref<1x8x16x4xbf16, #tpu.memory_space<vmem>>, vector<1x1x16x4xbf16>,
    %16 = vector.extract_strided_slice %11 {offsets = [0, 4], sizes = [16, 4], strides = [1, 1]} : vector<16x32xbf16> to vector<16x4xbf16>
    %c0_11 = arith.constant 0 : index
    %c1 = arith.constant 1 : index
    %c0_12 = arith.constant 0 : index
    %c0_13 = arith.constant 0 : index
    %17 = vector.load %arg4[%c0_11, %c1, %c0_12, %c0_13] : memref<1x8x16x4xbf16, #tpu.memory_space<vmem>>, vector<1x1x16x4xbf16>
    %18 = vector.shape_cast %17 : vector<1x1x16x4xbf16> to vector<16x4xbf16>
    %19 = vector.shape_cast %16 : vector<16x4xbf16> to vector<1x1x16x4xbf16>
    tpu.vector_store %arg4[%c0_11, %c1, %c0_12, %c0_13], %19 {strides = array<i32>} : memref<1x8x16x4xbf16, #tpu.memory_space<vmem>>, vector<1x1x16x4xbf16>,
    %20 = vector.extract_strided_slice %11 {offsets = [0, 8], sizes = [16, 4], strides = [1, 1]} : vector<16x32xbf16> to vector<16x4xbf16>
    %c0_14 = arith.constant 0 : index
    %c2 = arith.constant 2 : index
    %c0_15 = arith.constant 0 : index
    %c0_16 = arith.constant 0 : index
    %21 = vector.load %arg4[%c0_14, %c2, %c0_15, %c0_16] : memref<1x8x16x4xbf16, #tpu.memory_space<vmem>>, vector<1x1x16x4xbf16>
    %22 = vector.shape_cast %21 : vector<1x1x16x4xbf16> to vector<16x4xbf16>
    %23 = vector.shape_cast %20 : vector<16x4xbf16> to vector<1x1x16x4xbf16>
    tpu.vector_store %arg4[%c0_14, %c2, %c0_15, %c0_16], %23 {strides = array<i32>} : memref<1x8x16x4xbf16, #tpu.memory_space<vmem>>, vector<1x1x16x4xbf16>,
    %24 = vector.extract_strided_slice %11 {offsets = [0, 12], sizes = [16, 4], strides = [1, 1]} : vector<16x32xbf16> to vector<16x4xbf16>
    %c0_17 = arith.constant 0 : index
    %c3 = arith.constant 3 : index
    %c0_18 = arith.constant 0 : index
    %c0_19 = arith.constant 0 : index
    %25 = vector.load %arg4[%c0_17, %c3, %c0_18, %c0_19] : memref<1x8x16x4xbf16, #tpu.memory_space<vmem>>, vector<1x1x16x4xbf16>
    %26 = vector.shape_cast %25 : vector<1x1x16x4xbf16> to vector<16x4xbf16>
    %27 = vector.shape_cast %24 : vector<16x4xbf16> to vector<1x1x16x4xbf16>
    tpu.vector_store %arg4[%c0_17, %c3, %c0_18, %c0_19], %27 {strides = array<i32>} : memref<1x8x16x4xbf16, #tpu.memory_space<vmem>>, vector<1x1x16x4xbf16>,
    %28 = vector.extract_strided_slice %11 {offsets = [0, 16], sizes = [16, 4], strides = [1, 1]} : vector<16x32xbf16> to vector<16x4xbf16>
    %c0_20 = arith.constant 0 : index
    %c4 = arith.constant 4 : index
    %c0_21 = arith.constant 0 : index
    %c0_22 = arith.constant 0 : index
    %29 = vector.load %arg4[%c0_20, %c4, %c0_21, %c0_22] : memref<1x8x16x4xbf16, #tpu.memory_space<vmem>>, vector<1x1x16x4xbf16>
    %30 = vector.shape_cast %29 : vector<1x1x16x4xbf16> to vector<16x4xbf16>
    %31 = vector.shape_cast %28 : vector<16x4xbf16> to vector<1x1x16x4xbf16>
    tpu.vector_store %arg4[%c0_20, %c4, %c0_21, %c0_22], %31 {strides = array<i32>} : memref<1x8x16x4xbf16, #tpu.memory_space<vmem>>, vector<1x1x16x4xbf16>,
    %32 = vector.extract_strided_slice %11 {offsets = [0, 20], sizes = [16, 4], strides = [1, 1]} : vector<16x32xbf16> to vector<16x4xbf16>
    %c0_23 = arith.constant 0 : index
    %c5 = arith.constant 5 : index
    %c0_24 = arith.constant 0 : index
    %c0_25 = arith.constant 0 : index
    %33 = vector.load %arg4[%c0_23, %c5, %c0_24, %c0_25] : memref<1x8x16x4xbf16, #tpu.memory_space<vmem>>, vector<1x1x16x4xbf16>
    %34 = vector.shape_cast %33 : vector<1x1x16x4xbf16> to vector<16x4xbf16>
    %35 = vector.shape_cast %32 : vector<16x4xbf16> to vector<1x1x16x4xbf16>
    tpu.vector_store %arg4[%c0_23, %c5, %c0_24, %c0_25], %35 {strides = array<i32>} : memref<1x8x16x4xbf16, #tpu.memory_space<vmem>>, vector<1x1x16x4xbf16>,
    %36 = vector.extract_strided_slice %11 {offsets = [0, 24], sizes = [16, 4], strides = [1, 1]} : vector<16x32xbf16> to vector<16x4xbf16>
    %c0_26 = arith.constant 0 : index
    %c6 = arith.constant 6 : index
    %c0_27 = arith.constant 0 : index
    %c0_28 = arith.constant 0 : index
    %37 = vector.load %arg4[%c0_26, %c6, %c0_27, %c0_28] : memref<1x8x16x4xbf16, #tpu.memory_space<vmem>>, vector<1x1x16x4xbf16>
    %38 = vector.shape_cast %37 : vector<1x1x16x4xbf16> to vector<16x4xbf16>
    %39 = vector.shape_cast %36 : vector<16x4xbf16> to vector<1x1x16x4xbf16>
    tpu.vector_store %arg4[%c0_26, %c6, %c0_27, %c0_28], %39 {strides = array<i32>} : memref<1x8x16x4xbf16, #tpu.memory_space<vmem>>, vector<1x1x16x4xbf16>,
    %40 = vector.extract_strided_slice %11 {offsets = [0, 28], sizes = [16, 4], strides = [1, 1]} : vector<16x32xbf16> to vector<16x4xbf16>
    %c0_29 = arith.constant 0 : index
    %c7 = arith.constant 7 : index
    %c0_30 = arith.constant 0 : index
    %c0_31 = arith.constant 0 : index
    %41 = vector.load %arg4[%c0_29, %c7, %c0_30, %c0_31] : memref<1x8x16x4xbf16, #tpu.memory_space<vmem>>, vector<1x1x16x4xbf16>
    %42 = vector.shape_cast %41 : vector<1x1x16x4xbf16> to vector<16x4xbf16>
    %43 = vector.shape_cast %40 : vector<16x4xbf16> to vector<1x1x16x4xbf16>
    tpu.vector_store %arg4[%c0_29, %c7, %c0_30, %c0_31], %43 {strides = array<i32>} : memref<1x8x16x4xbf16, #tpu.memory_space<vmem>>, vector<1x1x16x4xbf16>,
    return
  }
  func.func @transform_0(%arg0: i32, %arg1: i32) -> (i32, i32, i32) {
    %c0_i32 = arith.constant 0 : i32
    %c0_i32_0 = arith.constant 0 : i32
    return %arg0, %arg1, %c0_i32 : i32, i32, i32
  }
  func.func @transform_1(%arg0: i32, %arg1: i32) -> (i32, i32) {
    %c0_i32 = arith.constant 0 : i32
    %c0_i32_0 = arith.constant 0 : i32
    %c0_i32_1 = arith.constant 0 : i32
    return %c0_i32, %c0_i32_0 : i32, i32
  }
  func.func @transform_2(%arg0: i32, %arg1: i32) -> (i32, i32, i32, i32) {
    %c0_i32 = arith.constant 0 : i32
    %c0_i32_0 = arith.constant 0 : i32
    %c0_i32_1 = arith.constant 0 : i32
    return %arg0, %c0_i32, %arg1, %c0_i32_0 : i32, i32, i32, i32
  }
}

</mosaic_0001>

<bundles_post_ra>
// kernel: tpu_custom_call.1
= control target key start
LH: loop header
LB: loop body
LE: loop exit
PB: predicated region body
PF: predicated region fallthrough
CT: control target
= control target key end

     0   :  { %7 = vsyncpa [#allocation3], 0  ;;  %s925_s0 = inlined_call_operand.hbm [shape: f32[2,16,32], index: 0, kind: input, shape index: {}]   ;;  %s926_s1 = inlined_call_operand.hbm [shape: bf16[32,32], index: 1, kind: input, shape index: {}]   ;;  %s927_s2 = inlined_call_operand.vmem [shape: bf16[2,8,16,4], index: 2, kind: output, shape index: {}]  }
   0x1   :  { %9 = vsyncpa [#allocation3 + $0x1], 0 }
   0x2   :  { %10 = vsyncpa [#allocation5], 0  ;;  %s733_s9 = smov 0   ;;  %s735_s10 = smov 0  }
   0x3   :  { %s737_s11 = smov 0   ;;  %s739_s12 = smov 0  }
   0x4   :  { %s741_s13 = smov 0   ;;  %s743_s14 = smov 0  }
   0x5 LB: > { %s457_s15 = sadd.s32 4294967295, %s701_s14   ;;  %p50_p0 = scmp.ne.s32.totalorder %s685_s10, %s681_s9  ;;  %s701_s14 = sphi %s743_s14, %s16_s14   ;;  %s697_s13 = sphi %s741_s13, %s944_s13   ;;  %s693_s12 = sphi %s739_s12, %s943_s12   ;;  %s689_s11 = sphi %s737_s11, %s942_s11   ;;  %s685_s10 = sphi %s735_s10, %s941_s10   ;;  %s681_s9 = sphi %s733_s9, %s940_s9  }
   0x6   : > { %p763_p1 = scmp.eq.s32.totalorder %s457_s15, 0  ;;  %p459_p2 = scmp.ge.s32.totalorder %s701_s14, 1 }
   0x7   : > { %p110_p3 = scmp.lt.s32.totalorder %s701_s14, 3  ;;  %s703_s19 = smov [#allocation4]  }
   0x8   : > { %s932_s16 = scalar_select %p763_p1, 1, 0 }
   0x9   : > { %p771_p4 = por %p763_p1, %p50_p0  ;;  %p775_p5 = pnand %p459_p2, %p110_p3 }
   0xa   : > { %s122_s20 = sshll.u32 %s703_s19, 4  ;;  %s28_s22 = sadd.s32 1, %s697_s13  ;;  %s123_s20 = int_to_ptr.vmem [resolvable:$true] %s122_s20 }
   0xb   : > { %s933_s17 = scalar_select %p771_p4, 1, 0 }
   0xc   : > { %s934_s18 = scalar_select %p775_p5, 1, 0 }
   0xd   : > { %p514_p6 = pneg %p775_p5  ;;  %s589_s25 = scalar_lea.hbm %s926_s1, 256 }
   0xe   : > { %p590_p8 = scmp.ne.s32.totalorder %s926_s1, %s589_s25  ;;  %p596_p12 = scmp.lt.u32.totalorder %s589_s25, %s926_s1 }
   0xf   : > { %p783_p7 = pnand %p514_p6, %p763_p1 }
  0x11   : > { %p591_p9 = pneg %p783_p7 }
  0x13   : > { %p592_p10 = pnand %p591_p9, %p590_p8 }
  0x15   : > { %p593_p11 = pneg %p592_p10 }
  0x17   : > { %p598_p13 = pnand %p596_p12, %p593_p11 }
  0x19   : > { %601 = shalt.err (!%p598_p13)
}
  0x1a   : > { %s602_s30 = scalar_lea.vmem %s123_s20, 256  ;;  %p610_p6 = scmp.lt.s32.totalorder %s123_s20, %s123_s20 }
  0x1b   : > { %p603_p0 = scmp.ne.s32.totalorder %s123_s20, %s602_s30  ;;  %p611_p1 = scmp.lt.s32.totalorder %s602_s30, %s602_s30 }
  0x1d   : > { %p605_p2 = pnand %p603_p0, %p591_p9  ;;  %p612_p4 = por %p611_p1, %p610_p6 }
  0x1f   : > { %p606_p3 = pneg %p605_p2 }
  0x21   : > { %p613_p5 = pnand %p612_p4, %p606_p3 }
  0x23   : > { %616 = shalt.err (!%p613_p5)
}
  0x24   : > { %s704_s3 = smov 64   ;;  %s705_s4 = smov 4  }
  0x25   : > { %517 = dma.hbm_to_vmem [thread:$0]  (!%p783_p7), %s926_s1, 256, %s123_s20, [#allocation5], %s704_s3, %s704_s3, %s705_s4  }
  0x26   : > { %p30_p1 = scmp.ge.s32.totalorder %s28_s22, 2  ;;  %s37_s7 = sadd.s32 1, %s689_s11 }
  0x27   : > { %p44_p4 = scmp.ne.s32.totalorder %s689_s11, %s685_s10  ;;  %p45_p5 = scmp.eq.s32.totalorder %s701_s14, 0 }
  0x28   : > { %s946_s22 = smov (%p30_p1, %s28_s22), 0  ;;  %p523_p9 = scmp.lt.s32.totalorder %s701_s14, 2 }
  0x29   : > { %p46_p8 = por %p45_p5, %p44_p4  ;;  %s32_s8 = ssub.s32 %s697_s13, %s946_s22 }
  0x2a   : > { %s136_s9 = sand.u32 1, %s689_s11   ;;  %p35_p10 = scmp.eq.s32.totalorder %s32_s8, 0 }
  0x2b   : > { %s462_s15 = sshll.u32 %s136_s9, 4  ;;  %s493_s19 = sshll.u32 %s697_s13, 8 }
  0x2c   : > { %s816_s23 = scalar_select %p35_p10, %s689_s11, %s37_s7  }
  0x2d   : > { %s821_s20 = scalar_lea.hbm %s925_s0, %s493_s19  ;;  %s140_s25 = scalar_lea.vmem [#allocation2], %s462_s15 }
  0x2e   : > { %s149_s26 = sshll.u32 %s140_s25, 4  ;;  %p823_p7 = pnand %p523_p9, %p46_p8  ;;  %s827_s26 = int_to_ptr.vmem [resolvable:$true] %s149_s26 }
  0x2f   : > { %s829_s28 = scalar_lea.sflag [#allocation3], %s136_s9  ;;  %s617_s29 = scalar_lea.hbm %s821_s20, 256 }
  0x30   : > { %p618_p11 = scmp.ne.s32.totalorder %s821_s20, %s617_s29  ;;  %p619_p12 = pneg %p823_p7 }
  0x31   : > { %s622_s4 = scalar_lea.hbm %s925_s0, 512  ;;  %p623_p2 = scmp.lt.u32.totalorder %s821_s20, %s925_s0 }
  0x32   : > { %p620_p13 = pnand %p619_p12, %p618_p11  ;;  %p624_p3 = scmp.lt.u32.totalorder %s622_s4, %s617_s29 }
  0x33   : > { %p626_p1 = scmp.lt.u32.totalorder %s617_s29, %s821_s20 }
  0x34   : > { %p621_p0 = pneg %p620_p13  ;;  %p625_p6 = por %p624_p3, %p623_p2 }
  0x36   : > { %p627_p4 = por %p626_p1, %p625_p6 }
  0x38   : > { %p628_p5 = pnand %p627_p4, %p621_p0 }
  0x3a   : > { %631 = shalt.err (!%p628_p5)
}
  0x3b   : > { %s632_s7 = scalar_lea.vmem %s827_s26, 256  ;;  %s706_s8 = smov [#allocation2]  }
  0x3c   : > { %p633_p8 = scmp.ne.s32.totalorder %s827_s26, %s632_s7  ;;  %s637_s9 = sshll.u32 %s706_s8, 4  ;;  %s638_s9 = int_to_ptr.vmem [resolvable:$false] %s637_s9 }
  0x3d   : > { %s639_s15 = scalar_lea.vmem %s638_s9, 512  ;;  %p640_p11 = scmp.lt.s32.totalorder %s827_s26, %s638_s9 }
  0x3e   : > { %p635_p9 = pnand %p633_p8, %p619_p12  ;;  %p641_p13 = scmp.lt.s32.totalorder %s639_s15, %s632_s7 }
  0x40   : > { %p636_p10 = pneg %p635_p9  ;;  %p642_p2 = por %p641_p13, %p640_p11 }
  0x42   : > { %p643_p3 = pnand %p642_p2, %p636_p10 }
  0x44   : > { %646 = shalt.err (!%p643_p3)
}
  0x45   : > { %s707_s19 = smov 128   ;;  %s708_s21 = smov 8  }
  0x46   : > { %521 = dma.hbm_to_vmem [thread:$0]  (!%p823_p7), %s821_s20, 256, %s827_s26, %s829_s28, %s707_s19, %s707_s19, %s708_s21  }
  0x47   : > { %p937_p12 = scmp.ne.s32.totalorder %s934_s18, 0 }
  0x48   : > { %s163_s24 = sand.u32 (!%p937_p12), 1, %s685_s10   ;;  %p938_p0 = scmp.ne.s32.totalorder (!%p937_p12), %s933_s17, 0 }
  0x49   : > { %161 = sbr.rel (%p937_p12) target bundleno = 451 (0x1c3), region = 28  ;;  %s466_s25 = sshll.u32 (!%p937_p12), %s163_s24, 4 }
  0x4a   : > { %s164_s29 = scalar_lea.sflag (!%p937_p12), [#allocation3], %s163_s24  ;;  %s167_s30 = scalar_lea.vmem (!%p937_p12), [#allocation2], %s466_s25 }
  0x50   : > { %672 = dma.done.wait (%p938_p0), %s164_s29, 256  }
  0x51   : > { %674 = vsyncadd (%p938_p0), %s164_s29, 4294967040  ;;  %p939_p6 = scmp.ne.s32.totalorder %s932_s16, 0 }
  0x53   : > { %676 = dma.done.wait (%p939_p6), [#allocation5], 256  }
  0x54   : > { %678 = vsyncadd (%p939_p6), [#allocation5], 4294967040  ;;  %v709_v0 = vmov 0.0   ;;  %vm710_vm0 = vmmov 0   ;;  %v587_v1 = vld [vmem:[#allocation4] sm:$0xff]   ;;  %v588_v2 = vld [vmem:[#allocation4 + $0x8] sm:$0xff]  }
  0x55   : > { %500 = vmatprep.subr.bf16.mxu0 %v709_v0  ;;  %504 = vmatprep.mubr.msk.bf16.mxu0 %vm710_vm0, %v709_v0  ;;  %v208_v3 = vld [vmem:[%s167_s30] sm:$0xff]  ;;  %v209_v4 = vld [vmem:[%s167_s30 + $0x8] sm:$0xff]  ;;  %vm227_vm1 = vcmask 261120   ;;  %p198_p7 = scmp.lt.s32.totalorder %s693_s12, 1  ;;  %vm286_vm2 = vcmask 27648   ;;  %s712_s26 = smov 124  }
  0x56   : > { %501 = vmatpush3.bf16.msra.mxu0 %v587_v1  ;;  %v210_v5 = vpack.c.bf16 %v209_v4, %v208_v3  ;;  %s713_s27 = smov 116   ;;  %s714_s28 = smov 112  }
  0x57   : > { %502 = vmatprep.subr.bf16.mxu0 %v709_v0  ;;  %s948_s12 = smov (!%p198_p7, %s693_s12), 1  ;;  %s715_s3 = smov 108  }
  0x58   : > { %s494_s16 = sshll.u32 %s948_s12, 6  ;;  %s711_s12 = smov 120  }
  0x59   : > { %s873_s20 = scalar_lea.vmem %s927_s2, %s494_s16  ;;  %s716_s4 = smov 104  }
  0x5a   : > { %503 = vmatpush3.bf16.msra.mxu0 %v588_v2  ;;  %s717_s5 = smov 100  }
  0x5d   : > { %505 = vmatmul.mubr.msk.bf16.vlgmr.msra.gmra.mrb[0].mxu0 %vm227_vm1, %v210_v5 }
 0x130   : > { %v265_v6 = vpop.f32.mrb[0].mxu0 }
 0x131   : > { %v473_v7 = vclamps-f32 %v265_v6, 255.0  ;;  %v506_v8 = vpop.f32.mrb[1].mxu0 }
 0x132   : > { %v268_v9 = vpop.f32.mrb[2].mxu0 }
 0x133   : > { %v276_v10 = vmul.f32 0.5, %v473_v7  ;;  %v474_v11 = vclamps-f32 %v268_v9, 255.0  ;;  %v507_v12 = vpop.f32.mrb[3].mxu0 }
 0x135   : > { %v495_v13 = vpack.c.bf16 %v276_v10, %v276_v10  ;;  %v277_v14 = vmul.f32 0.5, %v474_v11 }
 0x137   : > { %287 = vst.msk [vmem:[%s873_s20] sm:$0xf] %vm286_vm2, %v495_v13  ;;  %v496_v15 = vpack.c.bf16 %v277_v14, %v277_v14  ;;  %298 = vrot.lane.b32.xlu1 %v495_v13, %s711_s12  ;;  %289 = vrot.lane.b32.xlu0 %v495_v13, %s712_s26 }
 0x139   : > { %288 = vst.msk [vmem:[%s873_s20 + $0x4] sm:$0xf] %vm286_vm2, %v496_v15 }
 0x13b   : > { %307 = vrot.lane.b32.xlu0 %v495_v13, %s713_s27  ;;  %300 = vrot.lane.b32.xlu1 %v496_v15, %s711_s12 }
 0x13f   : > { %316 = vrot.lane.b32.xlu0 %v495_v13, %s714_s28  ;;  %309 = vrot.lane.b32.xlu1 %v496_v15, %s713_s27 }
 0x143   : > { %325 = vrot.lane.b32.xlu0 %v495_v13, %s715_s3  ;;  %318 = vrot.lane.b32.xlu1 %v496_v15, %s714_s28 }
 0x147   : > { %334 = vrot.lane.b32.xlu0 %v495_v13, %s716_s4  ;;  %327 = vrot.lane.b32.xlu1 %v496_v15, %s715_s3 }
 0x14b   : > { %336 = vrot.lane.b32.xlu1 %v496_v15, %s716_s4  ;;  %291 = vrot.lane.b32.xlu0 %v496_v15, %s712_s26 }
 0x14f   : > { %345 = vrot.lane.b32.xlu1 %v496_v15, %s717_s5  ;;  %343 = vrot.lane.b32.xlu0 %v495_v13, %s717_s5 }
 0x1a9   : > { %v299_v16 = vpop.permute.xlu1 %298  ;;  %v290_v17 = vpop.permute.xlu0 %289 }
 0x1aa   : > { %479 = vst.msk [vmem:[%s873_s20 + $0x10] sm:$0xf] %vm286_vm2, %v299_v16  ;;  %477 = vst.msk [vmem:[%s873_s20 + $0x8] sm:$0xf] %vm286_vm2, %v290_v17 }
 0x1ad   : > { %v308_v18 = vpop.permute.xlu0 %307  ;;  %v301_v19 = vpop.permute.xlu1 %300 }
 0x1ae   : > { %481 = vst.msk [vmem:[%s873_s20 + $0x18] sm:$0xf] %vm286_vm2, %v308_v18  ;;  %480 = vst.msk [vmem:[%s873_s20 + $0x14] sm:$0xf] %vm286_vm2, %v301_v19 }
 0x1b1   : > { %v317_v20 = vpop.permute.xlu0 %316  ;;  %v310_v21 = vpop.permute.xlu1 %309 }
 0x1b2   : > { %483 = vst.msk [vmem:[%s873_s20 + $0x20] sm:$0xf] %vm286_vm2, %v317_v20  ;;  %482 = vst.msk [vmem:[%s873_s20 + $0x1c] sm:$0xf] %vm286_vm2, %v310_v21 }
 0x1b5   : > { %v326_v22 = vpop.permute.xlu0 %325  ;;  %v319_v23 = vpop.permute.xlu1 %318 }
 0x1b6   : > { %485 = vst.msk [vmem:[%s873_s20 + $0x28] sm:$0xf] %vm286_vm2, %v326_v22  ;;  %484 = vst.msk [vmem:[%s873_s20 + $0x24] sm:$0xf] %vm286_vm2, %v319_v23 }
 0x1b9   : > { %v335_v24 = vpop.permute.xlu0 %334  ;;  %v328_v25 = vpop.permute.xlu1 %327 }
 0x1ba   : > { %487 = vst.msk [vmem:[%s873_s20 + $0x30] sm:$0xf] %vm286_vm2, %v335_v24  ;;  %486 = vst.msk [vmem:[%s873_s20 + $0x2c] sm:$0xf] %vm286_vm2, %v328_v25 }
 0x1bd   : > { %v337_v26 = vpop.permute.xlu1 %336  ;;  %v292_v27 = vpop.permute.xlu0 %291 }
 0x1be   : > { %488 = vst.msk [vmem:[%s873_s20 + $0x34] sm:$0xf] %vm286_vm2, %v337_v26  ;;  %478 = vst.msk [vmem:[%s873_s20 + $0xc] sm:$0xf] %vm286_vm2, %v292_v27 }
 0x1c1   : > { %v346_v28 = vpop.permute.xlu1 %345  ;;  %v344_v29 = vpop.permute.xlu0 %343 }
 0x1c2   : > { %490 = vst.msk [vmem:[%s873_s20 + $0x3c] sm:$0xf] %vm286_vm2, %v346_v28  ;;  %489 = vst.msk [vmem:[%s873_s20 + $0x38] sm:$0xf] %vm286_vm2, %v344_v29 }
 0x1c3 PF: > { %s16_s14 = sadd.s32 1, %s701_s14   ;;  %s940_s9 = smov %s685_s10 }
 0x1c4   : > { %p13_p1 = scmp.ge.s32.totalorder %s16_s14, 4   ;;  %s941_s10 = smov %s689_s11 }
 0x1c5   : > { %s942_s11 = smov %s816_s23  ;;  %s943_s12 = smov %s697_s13 }
 0x1c6   : > { %s944_s13 = smov %s946_s22  ;;  %15 = sbr.rel (!%p13_p1) target bundleno = 5 (0x5), region = 79 }
 0x1cd   :  { %382 = vsyncpa [#allocation3], 1 }
 0x1ce   :  { %384 = vsyncpa [#allocation3 + $0x1], 1 }
 0x1cf   :  { %385 = vsyncpa [#allocation5], 1 }

</bundles_post_ra>
